<compile_context>
chip_gen: v6e
topology: v6e:2x2x1
jax: 0.10.0
libtpu: 0.0.40
codegen_flags: <defaults>
</compile_context>

<pallas_src>
import jax
import jax.numpy as jnp
from jax.experimental import pallas as pl
from jax.experimental.pallas import tpu as pltpu

EPS = 1e-5
PAD = 128          # lane-dense padded feature width
N_LAYERS = 5


def generator_kernel(zx_ref, w_ref, v_ref, out_ref):
    """Full Generator forward. All refs are whole-array VMEM blocks.

    zx_ref : (B, 128)  f32    input, features zero-padded to 128 lanes
    w_ref  : (5, 128, 128) bf16  per-layer weights, zero-padded to 128x128
    v_ref  : (5, 8, 128) f32  per-layer vector tile:
                              BN layers 0..3: row0 = gamma, row1 = beta
                              layer 4       : row0 = final bias
    out_ref: (B, 128)  f32    output slab; caller slices [:, :u_size]
    """
    h = zx_ref[...].astype(jnp.float32)

    # Four (Linear -> BatchNorm1d(train) -> ReLU) blocks.
    # The Linear bias is omitted: it is exactly cancelled by BN's mean
    # subtraction, so the packed params never include it.
    for i in range(N_LAYERS - 1):
        w = w_ref[i]                       # (128, 128) bf16, static index
        vec = v_ref[i]                     # (8, 128) f32, own sublane tile
        g = vec[0:1, :]                    # gamma
        be = vec[1:2, :]                   # beta

        # bf16 x bf16 MXU matmul, f32 accumulate.
        h = jnp.dot(h.astype(jnp.bfloat16), w,
                    preferred_element_type=jnp.float32)

        # One-pass batch stats (clamped) + fused scale/shift, then ReLU.
        mean = jnp.mean(h, axis=0, keepdims=True)
        var = jnp.maximum(
            jnp.mean(h * h, axis=0, keepdims=True) - mean * mean, 0.0)
        scale = g * jax.lax.rsqrt(var + EPS)        # EUP rsqrt (free slot)
        shift = be - mean * scale
        h = jnp.maximum(h * scale + shift, 0.0)

    # Final Linear (no BN / ReLU).  Pad lanes of w5/b5 are zero, so pad
    # columns of the output slab are exactly zero.
    w5 = w_ref[N_LAYERS - 1]
    b5 = v_ref[N_LAYERS - 1][0:1, :]
    out_ref[...] = (jnp.dot(h.astype(jnp.bfloat16), w5,
                            preferred_element_type=jnp.float32) + b5)


def init_params(key, x_size, u_size, z_size):
    """Deterministic synthetic per-layer parameters (logical, unpadded)."""
    dims = [z_size + x_size, 64, 128, 128, 64, u_size]
    params = []
    for i in range(N_LAYERS):
        key, kw, kb = jax.random.split(key, 3)
        w = (jax.random.normal(kw, (dims[i], dims[i + 1]), jnp.float32)
             * (1.0 / jnp.sqrt(dims[i])))
        b = jax.random.normal(kb, (1, dims[i + 1]), jnp.float32) * 0.1
        params.append(w)
        params.append(b)
        if i < N_LAYERS - 1:                 # BatchNorm1d after first 4 linears
            key, kg, kbe = jax.random.split(key, 3)
            g = 1.0 + 0.1 * jax.random.normal(kg, (1, dims[i + 1]), jnp.float32)
            be = 0.1 * jax.random.normal(kbe, (1, dims[i + 1]), jnp.float32)
            params.append(g)
            params.append(be)
    return params


def pack_params(params):
    """Pack per-layer params into the two padded VMEM slabs.

    Returns:
      w_slab: (5, 128, 128) bf16   zero-padded weights
      v_slab: (5, 8, 128)   f32    per-layer tile: (gamma, beta) or final bias
    Linear biases of the four pre-BN layers are dropped (cancelled by BN).
    """
    w_slab = jnp.zeros((N_LAYERS, PAD, PAD), jnp.float32)
    v_slab = jnp.zeros((N_LAYERS, 8, PAD), jnp.float32)
    idx = 0
    for i in range(N_LAYERS):
        w, b = params[idx], params[idx + 1]
        idx += 2
        w_slab = w_slab.at[i, :w.shape[0], :w.shape[1]].set(w)
        if i < N_LAYERS - 1:
            g, be = params[idx], params[idx + 1]
            idx += 2
            v_slab = v_slab.at[i, 0, :g.shape[1]].set(g[0])
            v_slab = v_slab.at[i, 1, :be.shape[1]].set(be[0])
        else:
            v_slab = v_slab.at[i, 0, :b.shape[1]].set(b[0])
    return w_slab.astype(jnp.bfloat16), v_slab


def generator_forward(zx, w_slab, v_slab, u_size):
    batch, in_dim = zx.shape
    # Lane-dense input: pad features to 128 (cheap XLA op outside the kernel;
    # negligible at small B — see TODO above for the large-batch path).
    zx_pad = jnp.zeros((batch, PAD), jnp.float32).at[:, :in_dim].set(zx)

    vmem = pl.BlockSpec(memory_space=pltpu.MemorySpace.VMEM)
    out_pad = pl.pallas_call(
        generator_kernel,
        out_shape=jax.ShapeDtypeStruct((batch, PAD), jnp.float32),
        in_specs=[vmem, vmem, vmem],
        out_specs=vmem,
    )(zx_pad, w_slab, v_slab)
    return out_pad[:, :u_size]


def generator_reference(zx, params, weight_dtype=jnp.float32):
    """Pure-JAX reference (two-pass BN, unpadded, biases kept).

    weight_dtype=bfloat16 rounds the weights the same way the kernel's slab
    does, isolating kernel errors from weight-quantization error.
    """
    h = zx
    idx = 0
    for layer in range(N_LAYERS):
        w, b = params[idx], params[idx + 1]
        idx += 2
        w = w.astype(weight_dtype).astype(jnp.float32)
        h = h @ w + b
        if layer < N_LAYERS - 1:
            g, be = params[idx], params[idx + 1]
            idx += 2
            mean = jnp.mean(h, axis=0, keepdims=True)
            var = jnp.mean((h - mean) ** 2, axis=0, keepdims=True)
            h = (h - mean) * jax.lax.rsqrt(var + EPS) * g + be
            h = jnp.maximum(h, 0.0)
    return h


if __name__ == "__main__":
    x_size, u_size, z_size = 16, 4, 8
    batch = 8

    key = jax.random.PRNGKey(0)
    key, kzx = jax.random.split(key)
    zx = jax.random.normal(kzx, (batch, z_size + x_size), jnp.float32)

    params = init_params(key, x_size, u_size, z_size)
    w_slab, v_slab = pack_params(params)

    out = generator_forward(zx, w_slab, v_slab, u_size)
    out = jax.block_until_ready(out)
    assert out.shape == (batch, u_size)

    # Main check: same bf16-rounded weights as the kernel, f32 two-pass BN,
    # biases kept (verifies the bias-cancellation + fused-BN math).
    ref_bf16w = generator_reference(zx, params, weight_dtype=jnp.bfloat16)
    assert jnp.allclose(out, ref_bf16w, atol=3e-2, rtol=3e-2), \
        "Pallas output mismatch vs bf16-weight reference"

    # Sanity check vs full-f32 reference (difference = bf16 quantization).
    ref_f32 = generator_reference(zx, params, weight_dtype=jnp.float32)
    assert jnp.allclose(out, ref_f32, atol=1e-1, rtol=1e-1), \
        "Pallas output mismatch vs f32 reference"

    print("KERNEL_OK")
</pallas_src>

<mosaic_0001>
module attributes {stable_mosaic.version = 11 : i64} {
  func.func @generator_kernel(%arg0: memref<8x128xf32, #tpu.memory_space<vmem>>, %arg1: memref<5x128x128xbf16, #tpu.memory_space<vmem>>, %arg2: memref<5x8x128xf32, #tpu.memory_space<vmem>>, %arg3: memref<8x128xf32, #tpu.memory_space<vmem>>) attributes {dimension_semantics = [], scalar_prefetch = 0 : i64, scratch_operands = 0 : i64, tpu.core_type = #tpu.core_type<tc>} {
    %c0 = arith.constant 0 : index
    %c0_0 = arith.constant 0 : index
    %0 = vector.load %arg0[%c0, %c0_0] : memref<8x128xf32, #tpu.memory_space<vmem>>, vector<8x128xf32>
    %c0_1 = arith.constant 0 : index
    %c0_2 = arith.constant 0 : index
    %c0_3 = arith.constant 0 : index
    %1 = vector.load %arg1[%c0_1, %c0_2, %c0_3] : memref<5x128x128xbf16, #tpu.memory_space<vmem>>, vector<1x128x128xbf16>
    %2 = vector.shape_cast %1 : vector<1x128x128xbf16> to vector<128x128xbf16>
    %c0_4 = arith.constant 0 : index
    %c0_5 = arith.constant 0 : index
    %c0_6 = arith.constant 0 : index
    %3 = vector.load %arg2[%c0_4, %c0_5, %c0_6] : memref<5x8x128xf32, #tpu.memory_space<vmem>>, vector<1x8x128xf32>
    %4 = vector.shape_cast %3 : vector<1x8x128xf32> to vector<8x128xf32>
    %5 = vector.extract_strided_slice %4 {offsets = [0, 0], sizes = [1, 128], strides = [1, 1]} : vector<8x128xf32> to vector<1x128xf32>
    %6 = vector.extract_strided_slice %4 {offsets = [1, 0], sizes = [1, 128], strides = [1, 1]} : vector<8x128xf32> to vector<1x128xf32>
    %7 = arith.truncf %0 : vector<8x128xf32> to vector<8x128xbf16>
    %cst = arith.constant dense<0.000000e+00> : vector<8x128xf32>
    %8 = tpu.matmul %7, %2, %cst {dimension_numbers = #tpu.dot_dimension_numbers<[1], [0], [0], [1], [0, 0, 1, 1], [], []>} : vector<8x128xbf16>, vector<128x128xbf16>, vector<8x128xf32> -> vector<8x128xf32>
    %cst_7 = arith.constant dense<0.000000e+00> : vector<128xf32>
    %9 = vector.multi_reduction <add>, %8, %cst_7 [0] : vector<8x128xf32> to vector<128xf32>
    %10 = vector.shape_cast %9 : vector<128xf32> to vector<1x128xf32>
    %cst_8 = arith.constant 8.000000e+00 : f32
    %11 = vector.broadcast %cst_8 : f32 to vector<1x128xf32>
    %12 = arith.divf %10, %11 : vector<1x128xf32>
    %13 = arith.mulf %8, %8 : vector<8x128xf32>
    %cst_9 = arith.constant dense<0.000000e+00> : vector<128xf32>
    %14 = vector.multi_reduction <add>, %13, %cst_9 [0] : vector<8x128xf32> to vector<128xf32>
    %15 = vector.shape_cast %14 : vector<128xf32> to vector<1x128xf32>
    %cst_10 = arith.constant 8.000000e+00 : f32
    %16 = vector.broadcast %cst_10 : f32 to vector<1x128xf32>
    %17 = arith.divf %15, %16 : vector<1x128xf32>
    %18 = arith.mulf %12, %12 : vector<1x128xf32>
    %19 = arith.subf %17, %18 : vector<1x128xf32>
    %cst_11 = arith.constant 0.000000e+00 : f32
    %20 = vector.broadcast %cst_11 : f32 to vector<1x128xf32>
    %21 = arith.maximumf %19, %20 : vector<1x128xf32>
    %cst_12 = arith.constant 9.99999974E-6 : f32
    %22 = vector.broadcast %cst_12 : f32 to vector<1x128xf32>
    %23 = arith.addf %21, %22 : vector<1x128xf32>
    %24 = math.rsqrt %23 : vector<1x128xf32>
    %25 = arith.mulf %5, %24 : vector<1x128xf32>
    %26 = arith.mulf %12, %25 : vector<1x128xf32>
    %27 = arith.subf %6, %26 : vector<1x128xf32>
    %28 = vector.broadcast %25 : vector<1x128xf32> to vector<8x128xf32>
    %29 = arith.mulf %8, %28 : vector<8x128xf32>
    %30 = vector.broadcast %27 : vector<1x128xf32> to vector<8x128xf32>
    %31 = arith.addf %29, %30 : vector<8x128xf32>
    %cst_13 = arith.constant 0.000000e+00 : f32
    %32 = vector.broadcast %cst_13 : f32 to vector<8x128xf32>
    %33 = arith.maximumf %31, %32 : vector<8x128xf32>
    %c1 = arith.constant 1 : index
    %c0_14 = arith.constant 0 : index
    %c0_15 = arith.constant 0 : index
    %34 = vector.load %arg1[%c1, %c0_14, %c0_15] : memref<5x128x128xbf16, #tpu.memory_space<vmem>>, vector<1x128x128xbf16>
    %35 = vector.shape_cast %34 : vector<1x128x128xbf16> to vector<128x128xbf16>
    %c1_16 = arith.constant 1 : index
    %c0_17 = arith.constant 0 : index
    %c0_18 = arith.constant 0 : index
    %36 = vector.load %arg2[%c1_16, %c0_17, %c0_18] : memref<5x8x128xf32, #tpu.memory_space<vmem>>, vector<1x8x128xf32>
    %37 = vector.shape_cast %36 : vector<1x8x128xf32> to vector<8x128xf32>
    %38 = vector.extract_strided_slice %37 {offsets = [0, 0], sizes = [1, 128], strides = [1, 1]} : vector<8x128xf32> to vector<1x128xf32>
    %39 = vector.extract_strided_slice %37 {offsets = [1, 0], sizes = [1, 128], strides = [1, 1]} : vector<8x128xf32> to vector<1x128xf32>
    %40 = arith.truncf %33 : vector<8x128xf32> to vector<8x128xbf16>
    %cst_19 = arith.constant dense<0.000000e+00> : vector<8x128xf32>
    %41 = tpu.matmul %40, %35, %cst_19 {dimension_numbers = #tpu.dot_dimension_numbers<[1], [0], [0], [1], [0, 0, 1, 1], [], []>} : vector<8x128xbf16>, vector<128x128xbf16>, vector<8x128xf32> -> vector<8x128xf32>
    %cst_20 = arith.constant dense<0.000000e+00> : vector<128xf32>
    %42 = vector.multi_reduction <add>, %41, %cst_20 [0] : vector<8x128xf32> to vector<128xf32>
    %43 = vector.shape_cast %42 : vector<128xf32> to vector<1x128xf32>
    %cst_21 = arith.constant 8.000000e+00 : f32
    %44 = vector.broadcast %cst_21 : f32 to vector<1x128xf32>
    %45 = arith.divf %43, %44 : vector<1x128xf32>
    %46 = arith.mulf %41, %41 : vector<8x128xf32>
    %cst_22 = arith.constant dense<0.000000e+00> : vector<128xf32>
    %47 = vector.multi_reduction <add>, %46, %cst_22 [0] : vector<8x128xf32> to vector<128xf32>
    %48 = vector.shape_cast %47 : vector<128xf32> to vector<1x128xf32>
    %cst_23 = arith.constant 8.000000e+00 : f32
    %49 = vector.broadcast %cst_23 : f32 to vector<1x128xf32>
    %50 = arith.divf %48, %49 : vector<1x128xf32>
    %51 = arith.mulf %45, %45 : vector<1x128xf32>
    %52 = arith.subf %50, %51 : vector<1x128xf32>
    %cst_24 = arith.constant 0.000000e+00 : f32
    %53 = vector.broadcast %cst_24 : f32 to vector<1x128xf32>
    %54 = arith.maximumf %52, %53 : vector<1x128xf32>
    %cst_25 = arith.constant 9.99999974E-6 : f32
    %55 = vector.broadcast %cst_25 : f32 to vector<1x128xf32>
    %56 = arith.addf %54, %55 : vector<1x128xf32>
    %57 = math.rsqrt %56 : vector<1x128xf32>
    %58 = arith.mulf %38, %57 : vector<1x128xf32>
    %59 = arith.mulf %45, %58 : vector<1x128xf32>
    %60 = arith.subf %39, %59 : vector<1x128xf32>
    %61 = vector.broadcast %58 : vector<1x128xf32> to vector<8x128xf32>
    %62 = arith.mulf %41, %61 : vector<8x128xf32>
    %63 = vector.broadcast %60 : vector<1x128xf32> to vector<8x128xf32>
    %64 = arith.addf %62, %63 : vector<8x128xf32>
    %cst_26 = arith.constant 0.000000e+00 : f32
    %65 = vector.broadcast %cst_26 : f32 to vector<8x128xf32>
    %66 = arith.maximumf %64, %65 : vector<8x128xf32>
    %c2 = arith.constant 2 : index
    %c0_27 = arith.constant 0 : index
    %c0_28 = arith.constant 0 : index
    %67 = vector.load %arg1[%c2, %c0_27, %c0_28] : memref<5x128x128xbf16, #tpu.memory_space<vmem>>, vector<1x128x128xbf16>
    %68 = vector.shape_cast %67 : vector<1x128x128xbf16> to vector<128x128xbf16>
    %c2_29 = arith.constant 2 : index
    %c0_30 = arith.constant 0 : index
    %c0_31 = arith.constant 0 : index
    %69 = vector.load %arg2[%c2_29, %c0_30, %c0_31] : memref<5x8x128xf32, #tpu.memory_space<vmem>>, vector<1x8x128xf32>
    %70 = vector.shape_cast %69 : vector<1x8x128xf32> to vector<8x128xf32>
    %71 = vector.extract_strided_slice %70 {offsets = [0, 0], sizes = [1, 128], strides = [1, 1]} : vector<8x128xf32> to vector<1x128xf32>
    %72 = vector.extract_strided_slice %70 {offsets = [1, 0], sizes = [1, 128], strides = [1, 1]} : vector<8x128xf32> to vector<1x128xf32>
    %73 = arith.truncf %66 : vector<8x128xf32> to vector<8x128xbf16>
    %cst_32 = arith.constant dense<0.000000e+00> : vector<8x128xf32>
    %74 = tpu.matmul %73, %68, %cst_32 {dimension_numbers = #tpu.dot_dimension_numbers<[1], [0], [0], [1], [0, 0, 1, 1], [], []>} : vector<8x128xbf16>, vector<128x128xbf16>, vector<8x128xf32> -> vector<8x128xf32>
    %cst_33 = arith.constant dense<0.000000e+00> : vector<128xf32>
    %75 = vector.multi_reduction <add>, %74, %cst_33 [0] : vector<8x128xf32> to vector<128xf32>
    %76 = vector.shape_cast %75 : vector<128xf32> to vector<1x128xf32>
    %cst_34 = arith.constant 8.000000e+00 : f32
    %77 = vector.broadcast %cst_34 : f32 to vector<1x128xf32>
    %78 = arith.divf %76, %77 : vector<1x128xf32>
    %79 = arith.mulf %74, %74 : vector<8x128xf32>
    %cst_35 = arith.constant dense<0.000000e+00> : vector<128xf32>
    %80 = vector.multi_reduction <add>, %79, %cst_35 [0] : vector<8x128xf32> to vector<128xf32>
    %81 = vector.shape_cast %80 : vector<128xf32> to vector<1x128xf32>
    %cst_36 = arith.constant 8.000000e+00 : f32
    %82 = vector.broadcast %cst_36 : f32 to vector<1x128xf32>
    %83 = arith.divf %81, %82 : vector<1x128xf32>
    %84 = arith.mulf %78, %78 : vector<1x128xf32>
    %85 = arith.subf %83, %84 : vector<1x128xf32>
    %cst_37 = arith.constant 0.000000e+00 : f32
    %86 = vector.broadcast %cst_37 : f32 to vector<1x128xf32>
    %87 = arith.maximumf %85, %86 : vector<1x128xf32>
    %cst_38 = arith.constant 9.99999974E-6 : f32
    %88 = vector.broadcast %cst_38 : f32 to vector<1x128xf32>
    %89 = arith.addf %87, %88 : vector<1x128xf32>
    %90 = math.rsqrt %89 : vector<1x128xf32>
    %91 = arith.mulf %71, %90 : vector<1x128xf32>
    %92 = arith.mulf %78, %91 : vector<1x128xf32>
    %93 = arith.subf %72, %92 : vector<1x128xf32>
    %94 = vector.broadcast %91 : vector<1x128xf32> to vector<8x128xf32>
    %95 = arith.mulf %74, %94 : vector<8x128xf32>
    %96 = vector.broadcast %93 : vector<1x128xf32> to vector<8x128xf32>
    %97 = arith.addf %95, %96 : vector<8x128xf32>
    %cst_39 = arith.constant 0.000000e+00 : f32
    %98 = vector.broadcast %cst_39 : f32 to vector<8x128xf32>
    %99 = arith.maximumf %97, %98 : vector<8x128xf32>
    %c3 = arith.constant 3 : index
    %c0_40 = arith.constant 0 : index
    %c0_41 = arith.constant 0 : index
    %100 = vector.load %arg1[%c3, %c0_40, %c0_41] : memref<5x128x128xbf16, #tpu.memory_space<vmem>>, vector<1x128x128xbf16>
    %101 = vector.shape_cast %100 : vector<1x128x128xbf16> to vector<128x128xbf16>
    %c3_42 = arith.constant 3 : index
    %c0_43 = arith.constant 0 : index
    %c0_44 = arith.constant 0 : index
    %102 = vector.load %arg2[%c3_42, %c0_43, %c0_44] : memref<5x8x128xf32, #tpu.memory_space<vmem>>, vector<1x8x128xf32>
    %103 = vector.shape_cast %102 : vector<1x8x128xf32> to vector<8x128xf32>
    %104 = vector.extract_strided_slice %103 {offsets = [0, 0], sizes = [1, 128], strides = [1, 1]} : vector<8x128xf32> to vector<1x128xf32>
    %105 = vector.extract_strided_slice %103 {offsets = [1, 0], sizes = [1, 128], strides = [1, 1]} : vector<8x128xf32> to vector<1x128xf32>
    %106 = arith.truncf %99 : vector<8x128xf32> to vector<8x128xbf16>
    %cst_45 = arith.constant dense<0.000000e+00> : vector<8x128xf32>
    %107 = tpu.matmul %106, %101, %cst_45 {dimension_numbers = #tpu.dot_dimension_numbers<[1], [0], [0], [1], [0, 0, 1, 1], [], []>} : vector<8x128xbf16>, vector<128x128xbf16>, vector<8x128xf32> -> vector<8x128xf32>
    %cst_46 = arith.constant dense<0.000000e+00> : vector<128xf32>
    %108 = vector.multi_reduction <add>, %107, %cst_46 [0] : vector<8x128xf32> to vector<128xf32>
    %109 = vector.shape_cast %108 : vector<128xf32> to vector<1x128xf32>
    %cst_47 = arith.constant 8.000000e+00 : f32
    %110 = vector.broadcast %cst_47 : f32 to vector<1x128xf32>
    %111 = arith.divf %109, %110 : vector<1x128xf32>
    %112 = arith.mulf %107, %107 : vector<8x128xf32>
    %cst_48 = arith.constant dense<0.000000e+00> : vector<128xf32>
    %113 = vector.multi_reduction <add>, %112, %cst_48 [0] : vector<8x128xf32> to vector<128xf32>
    %114 = vector.shape_cast %113 : vector<128xf32> to vector<1x128xf32>
    %cst_49 = arith.constant 8.000000e+00 : f32
    %115 = vector.broadcast %cst_49 : f32 to vector<1x128xf32>
    %116 = arith.divf %114, %115 : vector<1x128xf32>
    %117 = arith.mulf %111, %111 : vector<1x128xf32>
    %118 = arith.subf %116, %117 : vector<1x128xf32>
    %cst_50 = arith.constant 0.000000e+00 : f32
    %119 = vector.broadcast %cst_50 : f32 to vector<1x128xf32>
    %120 = arith.maximumf %118, %119 : vector<1x128xf32>
    %cst_51 = arith.constant 9.99999974E-6 : f32
    %121 = vector.broadcast %cst_51 : f32 to vector<1x128xf32>
    %122 = arith.addf %120, %121 : vector<1x128xf32>
    %123 = math.rsqrt %122 : vector<1x128xf32>
    %124 = arith.mulf %104, %123 : vector<1x128xf32>
    %125 = arith.mulf %111, %124 : vector<1x128xf32>
    %126 = arith.subf %105, %125 : vector<1x128xf32>
    %127 = vector.broadcast %124 : vector<1x128xf32> to vector<8x128xf32>
    %128 = arith.mulf %107, %127 : vector<8x128xf32>
    %129 = vector.broadcast %126 : vector<1x128xf32> to vector<8x128xf32>
    %130 = arith.addf %128, %129 : vector<8x128xf32>
    %cst_52 = arith.constant 0.000000e+00 : f32
    %131 = vector.broadcast %cst_52 : f32 to vector<8x128xf32>
    %132 = arith.maximumf %130, %131 : vector<8x128xf32>
    %c4 = arith.constant 4 : index
    %c0_53 = arith.constant 0 : index
    %c0_54 = arith.constant 0 : index
    %133 = vector.load %arg1[%c4, %c0_53, %c0_54] : memref<5x128x128xbf16, #tpu.memory_space<vmem>>, vector<1x128x128xbf16>
    %134 = vector.shape_cast %133 : vector<1x128x128xbf16> to vector<128x128xbf16>
    %c4_55 = arith.constant 4 : index
    %c0_56 = arith.constant 0 : index
    %c0_57 = arith.constant 0 : index
    %135 = vector.load %arg2[%c4_55, %c0_56, %c0_57] : memref<5x8x128xf32, #tpu.memory_space<vmem>>, vector<1x8x128xf32>
    %136 = vector.shape_cast %135 : vector<1x8x128xf32> to vector<8x128xf32>
    %137 = vector.extract_strided_slice %136 {offsets = [0, 0], sizes = [1, 128], strides = [1, 1]} : vector<8x128xf32> to vector<1x128xf32>
    %138 = arith.truncf %132 : vector<8x128xf32> to vector<8x128xbf16>
    %cst_58 = arith.constant dense<0.000000e+00> : vector<8x128xf32>
    %139 = tpu.matmul %138, %134, %cst_58 {dimension_numbers = #tpu.dot_dimension_numbers<[1], [0], [0], [1], [0, 0, 1, 1], [], []>} : vector<8x128xbf16>, vector<128x128xbf16>, vector<8x128xf32> -> vector<8x128xf32>
    %140 = vector.broadcast %137 : vector<1x128xf32> to vector<8x128xf32>
    %141 = arith.addf %139, %140 : vector<8x128xf32>
    %c0_59 = arith.constant 0 : index
    %c0_60 = arith.constant 0 : index
    %142 = vector.load %arg3[%c0_59, %c0_60] : memref<8x128xf32, #tpu.memory_space<vmem>>, vector<8x128xf32>
    tpu.vector_store %arg3[%c0_59, %c0_60], %141 {strides = array<i32>} : memref<8x128xf32, #tpu.memory_space<vmem>>, vector<8x128xf32>,
    return
  }
}

</mosaic_0001>

<bundles_post_ra>
// kernel: tpu_custom_call.1
= control target key start
LH: loop header
LB: loop body
LE: loop exit
PB: predicated region body
PF: predicated region fallthrough
CT: control target
= control target key end

     0   :  { %8 = vsyncpa [#allocation3], 0  ;;  %s1198_s0 = inlined_call_operand.hbm [shape: f32[8,128], index: 0, kind: input, shape index: {}]   ;;  %s1199_s1 = inlined_call_operand.hbm [shape: bf16[5,128,128], index: 1, kind: input, shape index: {}]   ;;  %s1200_s2 = inlined_call_operand.hbm [shape: f32[5,8,128], index: 2, kind: input, shape index: {}]   ;;  %s1201_s3 = inlined_call_operand.hbm [shape: f32[8,128], index: 3, kind: output, shape index: {}]  }
   0x1   :  { %9 = vsyncpa [#allocation6], 0 }
   0x2   :  { %10 = vsyncpa [#allocation4], 0  ;;  %s1093_s12 = smov [#allocation5]  }
   0x3   :  { %s26_s13 = sshll.u32 %s1093_s12, 4  ;;  %s27_s13 = int_to_ptr.vmem [resolvable:$true] %s26_s13 }
   0x4   :  { %s1015_s14 = scalar_lea.vmem %s27_s13, 5120  ;;  %p1020_p1 = scmp.lt.s32.totalorder %s27_s13, %s27_s13 }
   0x5   :  { %p1016_p0 = scmp.ne.s32.totalorder %s27_s13, %s1015_s14  ;;  %p1021_p2 = scmp.lt.s32.totalorder %s1015_s14, %s1015_s14 }
   0x7   :  { %p1022_p3 = por %p1021_p2, %p1020_p1 }
   0x9   :  { %p1023_p4 = pnand %p1022_p3, %p1016_p0 }
   0xb   :  { %1026 = shalt.err (!%p1023_p4)
}
   0xc   :  { %s1094_s15 = smov 64   ;;  %s1095_s16 = smov 4  }
   0xd   :  { %32 = dma.hbm_to_vmem [thread:$0]  %s1199_s1, 5120, %s27_s13, [#allocation6], %s1094_s15, %s1094_s15, %s1095_s16  }
   0xe   :  { %s1096_s19 = smov [#allocation2]   ;;  %s1097_s21 = smov [#allocation7]  }
   0xf   :  { %s17_s20 = sshll.u32 %s1096_s19, 4  ;;  %s38_s22 = sshll.u32 %s1097_s21, 4  ;;  %s18_s20 = int_to_ptr.vmem [resolvable:$true] %s17_s20  ;;  %s39_s22 = int_to_ptr.vmem [resolvable:$true] %s38_s22 }
  0x10   :  { %s1035_s23 = scalar_lea.vmem %s18_s20, 128  ;;  %p1040_p6 = scmp.lt.s32.totalorder %s18_s20, %s18_s20 }
  0x11   :  { %p1036_p5 = scmp.ne.s32.totalorder %s18_s20, %s1035_s23  ;;  %p1041_p7 = scmp.lt.s32.totalorder %s1035_s23, %s1035_s23 }
  0x13   :  { %p1042_p8 = por %p1041_p7, %p1040_p6 }
  0x15   :  { %p1043_p9 = pnand %p1042_p8, %p1036_p5 }
  0x17   :  { %1046 = shalt.err (!%p1043_p9)
}
  0x18   :  { %20 = dma.hbm_to_vmem [thread:$0]  %s1198_s0, 128, %s18_s20, [#allocation3]  }
  0x19   :  { %s1055_s26 = scalar_lea.vmem %s39_s22, 640  ;;  %p1060_p11 = scmp.lt.s32.totalorder %s39_s22, %s39_s22 }
  0x1a   :  { %p1056_p10 = scmp.ne.s32.totalorder %s39_s22, %s1055_s26  ;;  %p1061_p12 = scmp.lt.s32.totalorder %s1055_s26, %s1055_s26 }
  0x1c   :  { %p1062_p13 = por %p1061_p12, %p1060_p11 }
  0x1e   :  { %p1063_p0 = pnand %p1062_p13, %p1056_p10 }
  0x20   :  { %1066 = shalt.err (!%p1063_p0)
}
  0x21   :  { %s1098_s1 = smov 128   ;;  %s1099_s27 = smov 8  }
  0x22   :  { %44 = dma.hbm_to_vmem [thread:$0]  %s1200_s2, 640, %s39_s22, [#allocation6], %s1098_s1, %s1098_s1, %s1099_s27  }
  0x23   :  { %1087 = dma.done.wait [#allocation3], 128  }
  0x24   :  { %1088 = vsyncadd [#allocation3], 4294967168 }
  0x25   :  { %1089 = dma.done.wait [#allocation6], 5760  }
  0x26   :  { %1090 = vsyncadd [#allocation6], 4294961536  ;;  %v1100_v0 = vmov 0.0   ;;  %vm1101_vm0 = vmmov 0   ;;  %v959_v1 = vld [vmem:[#allocation5 + $0x38] sm:$0xff]   ;;  %v960_v2 = vld [vmem:[#allocation5 + $0x30] sm:$0xff]   ;;  %v189_v42 = vlaneseq }
  0x27   :  { %849 = vmatprep.subr.bf16.mxu0 %v1100_v0  ;;  %865 = vmatprep.mubr.msk.bf16.mxu0 %vm1101_vm0, %v1100_v0  ;;  %v961_v3 = vld [vmem:[#allocation5 + $0x28] sm:$0xff]   ;;  %v962_v4 = vld [vmem:[#allocation5 + $0x20] sm:$0xff]   ;;  %v963_v5 = vld [vmem:[#allocation5 + $0x18] sm:$0xff]   ;;  %s1102_s0 = smov [#allocation8]  }
  0x28   :  { %869 = vmatprep.subr.bf16.mxu1 %v1100_v0  ;;  %885 = vmatprep.mubr.msk.bf16.mxu1 %vm1101_vm0, %v1100_v0  ;;  %v964_v6 = vld [vmem:[#allocation5 + $0x10] sm:$0xff]   ;;  %v965_v7 = vld [vmem:[#allocation5 + $0x8] sm:$0xff]   ;;  %v966_v8 = vld [vmem:[#allocation5] sm:$0xff]   ;;  %v190_v43 = vshrl.u32 %v189_v42, 7  ;;  %s754_s2 = sshll.u32 %s1102_s0, 4  ;;  %s755_s2 = int_to_ptr.vmem [resolvable:$true] %s754_s2 }
  0x29   :  { %850 = vmatpush3.bf16.msra.mxu0 %v959_v1  ;;  %v55_v9 = vld [vmem:[#allocation2] sm:$0xff]  ;;  %v968_v12 = vld [vmem:[#allocation5 + $0x70] sm:$0xff]   ;;  %v969_v13 = vld [vmem:[#allocation5 + $0x68] sm:$0xff]   ;;  %s1067_s30 = scalar_lea.vmem %s755_s2, 128  ;;  %p1072_p2 = scmp.lt.s32.totalorder %s755_s2, %s755_s2 }
  0x2a   :  { %851 = vmatprep.subr.bf16.mxu0 %v1100_v0  ;;  %v73_v10 = vpack.c.bf16 %v55_v9, %v55_v9  ;;  %v967_v11 = vld [vmem:[#allocation5 + $0x78] sm:$0xff]   ;;  %v970_v14 = vld [vmem:[#allocation5 + $0x60] sm:$0xff]   ;;  %v972_v16 = vld [vmem:[#allocation5 + $0x50] sm:$0xff]   ;;  %v1156_v47 = vsub.s32 0, %v190_v43  ;;  %v1159_v51 = vsub.s32 1, %v190_v43  ;;  %p1068_p1 = scmp.ne.s32.totalorder %s755_s2, %s1067_s30  ;;  %p1073_p3 = scmp.lt.s32.totalorder %s1067_s30, %s1067_s30 }
  0x2b   :  { %870 = vmatpush3.bf16.msra.mxu1 %v967_v11  ;;  %v971_v15 = vld [vmem:[#allocation5 + $0x58] sm:$0xff]   ;;  %v973_v17 = vld [vmem:[#allocation5 + $0x48] sm:$0xff]   ;;  %v974_v18 = vld [vmem:[#allocation5 + $0x40] sm:$0xff]  }
  0x2c   :  { %871 = vmatprep.subr.bf16.mxu1 %v1100_v0  ;;  %v72_v44 = vld [vmem:[#allocation7] sm:$0xff]  ;;  %v975_v58 = vld [vmem:[#allocation5 + $0xb8] sm:$0xff]   ;;  %v976_v59 = vld [vmem:[#allocation5 + $0xb0] sm:$0xff]   ;;  %p1074_p4 = por %p1073_p3, %p1072_p2 }
  0x2d   :  { %852 = vmatpush3.bf16.msra.mxu0 %v960_v2  ;;  %v977_v60 = vld [vmem:[#allocation5 + $0xa8] sm:$0xff]   ;;  %v978_v61 = vld [vmem:[#allocation5 + $0xa0] sm:$0xff]   ;;  %v979_v62 = vld [vmem:[#allocation5 + $0x98] sm:$0xff]  }
  0x2e   :  { %853 = vmatprep.subr.bf16.mxu0 %v1100_v0  ;;  %v980_v63 = vld [vmem:[#allocation5 + $0x90] sm:$0xff]   ;;  %v981_v1 = vld [vmem:[#allocation5 + $0x88] sm:$0xff]   ;;  %v982_v2 = vld [vmem:[#allocation5 + $0x80] sm:$0xff]   ;;  %p1075_p5 = pnand %p1074_p4, %p1068_p1 }
  0x2f   :  { %872 = vmatpush3.bf16.msra.mxu1 %v968_v12  ;;  %v987_v42 = vld [vmem:[#allocation5 + $0xd8] sm:$0xff]   ;;  %v988_v43 = vld [vmem:[#allocation5 + $0xd0] sm:$0xff]  }
  0x30   :  { %873 = vmatprep.subr.bf16.mxu1 %v1100_v0 }
  0x31   :  { %854 = vmatpush3.bf16.msra.mxu0 %v961_v3 }
  0x32   :  { %855 = vmatprep.subr.bf16.mxu0 %v1100_v0 }
  0x33   :  { %874 = vmatpush3.bf16.msra.mxu1 %v969_v13 }
  0x34   :  { %875 = vmatprep.subr.bf16.mxu1 %v1100_v0 }
  0x35   :  { %856 = vmatpush3.bf16.msra.mxu0 %v962_v4 }
  0x36   :  { %857 = vmatprep.subr.bf16.mxu0 %v1100_v0 }
  0x37   :  { %876 = vmatpush3.bf16.msra.mxu1 %v970_v14 }
  0x38   :  { %877 = vmatprep.subr.bf16.mxu1 %v1100_v0 }
  0x39   :  { %858 = vmatpush3.bf16.msra.mxu0 %v963_v5 }
  0x3a   :  { %859 = vmatprep.subr.bf16.mxu0 %v1100_v0 }
  0x3b   :  { %878 = vmatpush3.bf16.msra.mxu1 %v971_v15 }
  0x3c   :  { %879 = vmatprep.subr.bf16.mxu1 %v1100_v0 }
  0x3d   :  { %860 = vmatpush3.bf16.msra.mxu0 %v964_v6 }
  0x3e   :  { %861 = vmatprep.subr.bf16.mxu0 %v1100_v0 }
  0x3f   :  { %880 = vmatpush3.bf16.msra.mxu1 %v972_v16 }
  0x40   :  { %881 = vmatprep.subr.bf16.mxu1 %v1100_v0 }
  0x41   :  { %862 = vmatpush3.bf16.msra.mxu0 %v965_v7 }
  0x42   :  { %863 = vmatprep.subr.bf16.mxu0 %v1100_v0 }
  0x43   :  { %882 = vmatpush3.bf16.msra.mxu1 %v973_v17 }
  0x44   :  { %883 = vmatprep.subr.bf16.mxu1 %v1100_v0 }
  0x45   :  { %864 = vmatpush3.bf16.msra.mxu0 %v966_v8 }
  0x46   :  { %889 = vmatprep.subr.bf16.mxu0 %v1100_v0 }
  0x47   :  { %884 = vmatpush3.bf16.msra.mxu1 %v974_v18 }
  0x48   :  { %866 = vmatmul.mubr.bf16.vlgmr.msra.gmra.mxu0 %v73_v10  ;;  %909 = vmatprep.subr.bf16.mxu1 %v1100_v0 }
  0x49   :  { %905 = vmatprep.mubr.msk.bf16.mxu0 %vm1101_vm0, %v1100_v0  ;;  %890 = vmatpush3.bf16.msra.mxu0 %v975_v58 }
  0x4a   :  { %891 = vmatprep.subr.bf16.mxu0 %v1100_v0 }
  0x4d   :  { %892 = vmatpush3.bf16.msra.mxu0 %v976_v59 }
  0x4e   :  { %893 = vmatprep.subr.bf16.mxu0 %v1100_v0 }
  0x51   :  { %894 = vmatpush3.bf16.msra.mxu0 %v977_v60 }
  0x52   :  { %895 = vmatprep.subr.bf16.mxu0 %v1100_v0 }
  0x55   :  { %896 = vmatpush3.bf16.msra.mxu0 %v978_v61 }
  0x56   :  { %897 = vmatprep.subr.bf16.mxu0 %v1100_v0 }
  0x59   :  { %898 = vmatpush3.bf16.msra.mxu0 %v979_v62 }
  0x5a   :  { %899 = vmatprep.subr.bf16.mxu0 %v1100_v0 }
  0x5d   :  { %900 = vmatpush3.bf16.msra.mxu0 %v980_v63 }
  0x5e   :  { %901 = vmatprep.subr.bf16.mxu0 %v1100_v0 }
  0x61   :  { %902 = vmatpush3.bf16.msra.mxu0 %v981_v1 }
  0x62   :  { %903 = vmatprep.subr.bf16.mxu0 %v1100_v0 }
  0x65   :  { %904 = vmatpush3.bf16.msra.mxu0 %v982_v2 }
  0x66   :  { %929 = vmatprep.subr.bf16.mxu0 %v1100_v0 }
 0x108   :  { %v156_v19 = vpop.f32.mrf.mxu0 }
 0x109   :  { %v162_v20 = vrot.slane %v156_v19, 4  ;;  %v170_v21 = vmul.f32 %v156_v19, %v156_v19 }
 0x10a   :  { %v867_v22 = vpop.f32.mrf.mxu0 }
 0x10b   :  { %v163_v23 = vadd.f32 %v162_v20, %v156_v19  ;;  %v171_v24 = vrot.slane %v170_v21, 4 }
 0x10c   :  { %v159_v25 = vpop.f32.mrf.mxu0 }
 0x10d   :  { %v164_v26 = vrot.slane %v163_v23, 2  ;;  %v172_v27 = vadd.f32 %v171_v24, %v170_v21 }
 0x10e   :  { %v868_v28 = vpop.f32.mrf.mxu0 }
 0x10f   :  { %v165_v29 = vadd.f32 %v164_v26, %v163_v23  ;;  %v173_v30 = vrot.slane %v172_v27, 2  ;;  %v218_v26 = vld [vmem:[#allocation7 + $0x8] sm:$0xff] }
 0x111   :  { %v166_v31 = vrot.slane %v165_v29, 1  ;;  %v174_v32 = vadd.f32 %v173_v30, %v172_v27 }
 0x113   :  { %v167_v33 = vadd.f32 %v166_v31, %v165_v29  ;;  %v175_v34 = vrot.slane %v174_v32, 1 }
 0x115   :  { %v169_v35 = vmul.f32 0.125, %v167_v33  ;;  %v176_v36 = vadd.f32 %v175_v34, %v174_v32 }
 0x117   :  { %v177_v37 = vmul.f32 0.125, %v176_v36  ;;  %v178_v38 = vmul.f32 %v169_v35, %v169_v35 }
 0x119   :  { %v179_v39 = vsub.f32 %v177_v37, %v178_v38  ;;  %v983_v38 = vld [vmem:[#allocation5 + $0xf8] sm:$0xff]  }
 0x11b   :  { %v180_v40 = vmax.f32 %v179_v39, 0.0  ;;  %v984_v39 = vld [vmem:[#allocation5 + $0xf0] sm:$0xff]  }
 0x11d   :  { %v181_v41 = vadd.f32 1e-05, %v180_v40  ;;  %v985_v40 = vld [vmem:[#allocation5 + $0xe8] sm:$0xff]  }
 0x11f   :  { %999 = vrsqrt.f32 %v181_v41  ;;  %v986_v41 = vld [vmem:[#allocation5 + $0xe0] sm:$0xff]  }
 0x12c   :  { %v1000_v45 = vpop.eup %999 }
 0x12d   :  { %v183_v46 = vmul.f32 %v1000_v45, %v72_v44  ;;  %v990_v45 = vld [vmem:[#allocation5 + $0xc0] sm:$0xff]  }
 0x12f   :  { %v184_v48 = vmul.f32 %v183_v46, %v169_v35  ;;  %v192_v49 = vrot.slane %v183_v46, %v1156_v47 }
 0x131   :  { %v186_v50 = vrot.slane %v184_v48, 7  ;;  %v193_v53 = vmul.f32 %v192_v49, %v156_v19 }
 0x133   :  { %v188_v52 = vsub.f32 %v72_v44, %v186_v50  ;;  %v989_v44 = vld [vmem:[#allocation5 + $0xc8] sm:$0xff]  }
 0x135   :  { %v197_v54 = vrot.slane %v188_v52, %v1159_v51 }
 0x137   :  { %v198_v55 = vadd.f32 %v197_v54, %v193_v53 }
 0x139   :  { %v199_v56 = vmax.f32 %v198_v55, 0.0 }
 0x13b   :  { %v219_v57 = vpack.c.bf16 %v199_v56, %v199_v56 }
 0x13d   :  { %886 = vmatmul.mubr.bf16.vlgmr.msra.gmra.mxu1 %v219_v57 }
 0x13e   :  { %925 = vmatprep.mubr.msk.bf16.mxu1 %vm1101_vm0, %v1100_v0  ;;  %910 = vmatpush3.bf16.msra.mxu1 %v983_v38 }
 0x13f   :  { %911 = vmatprep.subr.bf16.mxu1 %v1100_v0 }
 0x142   :  { %912 = vmatpush3.bf16.msra.mxu1 %v984_v39 }
 0x143   :  { %913 = vmatprep.subr.bf16.mxu1 %v1100_v0 }
 0x146   :  { %914 = vmatpush3.bf16.msra.mxu1 %v985_v40 }
 0x147   :  { %915 = vmatprep.subr.bf16.mxu1 %v1100_v0 }
 0x14a   :  { %916 = vmatpush3.bf16.msra.mxu1 %v986_v41 }
 0x14b   :  { %917 = vmatprep.subr.bf16.mxu1 %v1100_v0 }
 0x14e   :  { %918 = vmatpush3.bf16.msra.mxu1 %v987_v42 }
 0x14f   :  { %919 = vmatprep.subr.bf16.mxu1 %v1100_v0 }
 0x152   :  { %920 = vmatpush3.bf16.msra.mxu1 %v988_v43 }
 0x153   :  { %921 = vmatprep.subr.bf16.mxu1 %v1100_v0 }
 0x156   :  { %922 = vmatpush3.bf16.msra.mxu1 %v989_v44 }
 0x157   :  { %923 = vmatprep.subr.bf16.mxu1 %v1100_v0 }
 0x15a   :  { %924 = vmatpush3.bf16.msra.mxu1 %v990_v45 }
 0x1fd   :  { %v302_v3 = vpop.f32.mrf.mxu1 }
 0x1fe   :  { %v308_v4 = vrot.slane %v302_v3, 4  ;;  %v315_v5 = vmul.f32 %v302_v3, %v302_v3 }
 0x1ff   :  { %v887_v6 = vpop.f32.mrf.mxu1 }
 0x200   :  { %v309_v7 = vadd.f32 %v308_v4, %v302_v3  ;;  %v316_v8 = vrot.slane %v315_v5, 4 }
 0x201   :  { %v305_v9 = vpop.f32.mrf.mxu1 }
 0x202   :  { %v310_v10 = vrot.slane %v309_v7, 2  ;;  %v317_v11 = vadd.f32 %v316_v8, %v315_v5  ;;  %v363_v8 = vld [vmem:[#allocation7 + $0x10] sm:$0xff] }
 0x203   :  { %v888_v12 = vpop.f32.mrf.mxu1 }
 0x204   :  { %v311_v13 = vadd.f32 %v310_v10, %v309_v7  ;;  %v318_v14 = vrot.slane %v317_v11, 2 }
 0x206   :  { %v312_v15 = vrot.slane %v311_v13, 1  ;;  %v319_v16 = vadd.f32 %v318_v14, %v317_v11 }
 0x208   :  { %v313_v17 = vadd.f32 %v312_v15, %v311_v13  ;;  %v320_v18 = vrot.slane %v319_v16, 1 }
 0x20a   :  { %v314_v19 = vmul.f32 0.125, %v313_v17  ;;  %v321_v20 = vadd.f32 %v320_v18, %v319_v16 }
 0x20c   :  { %v322_v21 = vmul.f32 0.125, %v321_v20  ;;  %v323_v22 = vmul.f32 %v314_v19, %v314_v19  ;;  %v991_v20 = vld [vmem:[#allocation5 + $0x138] sm:$0xff]  }
 0x20e   :  { %v324_v23 = vsub.f32 %v322_v21, %v323_v22  ;;  %v992_v21 = vld [vmem:[#allocation5 + $0x130] sm:$0xff]   ;;  %v993_v22 = vld [vmem:[#allocation5 + $0x128] sm:$0xff]  }
 0x210   :  { %v325_v24 = vmax.f32 %v324_v23, 0.0  ;;  %v994_v23 = vld [vmem:[#allocation5 + $0x120] sm:$0xff]  }
 0x212   :  { %v326_v25 = vadd.f32 1e-05, %v325_v24  ;;  %v995_v24 = vld [vmem:[#allocation5 + $0x118] sm:$0xff]  }
 0x214   :  { %1001 = vrsqrt.f32 %v326_v25  ;;  %v996_v25 = vld [vmem:[#allocation5 + $0x110] sm:$0xff]  }
 0x221   :  { %v1002_v27 = vpop.eup %1001 }
 0x222   :  { %v328_v28 = vmul.f32 %v1002_v27, %v218_v26  ;;  %v998_v27 = vld [vmem:[#allocation5 + $0x100] sm:$0xff]  }
 0x224   :  { %v329_v29 = vmul.f32 %v328_v28, %v314_v19  ;;  %v337_v31 = vrot.slane %v328_v28, %v1156_v47 }
 0x226   :  { %v331_v30 = vrot.slane %v329_v29, 7  ;;  %v338_v33 = vmul.f32 %v337_v31, %v302_v3 }
 0x228   :  { %v333_v32 = vsub.f32 %v218_v26, %v331_v30  ;;  %v997_v26 = vld [vmem:[#allocation5 + $0x108] sm:$0xff]  }
 0x22a   :  { %v342_v34 = vrot.slane %v333_v32, %v1159_v51 }
 0x22c   :  { %v343_v35 = vadd.f32 %v342_v34, %v338_v33 }
 0x22e   :  { %v344_v36 = vmax.f32 %v343_v35, 0.0 }
 0x230   :  { %v364_v37 = vpack.c.bf16 %v344_v36, %v344_v36 }
 0x232   :  { %906 = vmatmul.mubr.bf16.vlgmr.msra.gmra.mxu0 %v364_v37 }
 0x233   :  { %945 = vmatprep.mubr.msk.bf16.mxu0 %vm1101_vm0, %v1100_v0  ;;  %930 = vmatpush3.bf16.msra.mxu0 %v991_v20 }
 0x234   :  { %931 = vmatprep.subr.bf16.mxu0 %v1100_v0 }
 0x237   :  { %932 = vmatpush3.bf16.msra.mxu0 %v992_v21 }
 0x238   :  { %933 = vmatprep.subr.bf16.mxu0 %v1100_v0 }
 0x23b   :  { %934 = vmatpush3.bf16.msra.mxu0 %v993_v22 }
 0x23c   :  { %935 = vmatprep.subr.bf16.mxu0 %v1100_v0 }
 0x23f   :  { %936 = vmatpush3.bf16.msra.mxu0 %v994_v23 }
 0x240   :  { %937 = vmatprep.subr.bf16.mxu0 %v1100_v0 }
 0x243   :  { %938 = vmatpush3.bf16.msra.mxu0 %v995_v24 }
 0x244   :  { %939 = vmatprep.subr.bf16.mxu0 %v1100_v0 }
 0x247   :  { %940 = vmatpush3.bf16.msra.mxu0 %v996_v25 }
 0x248   :  { %941 = vmatprep.subr.bf16.mxu0 %v1100_v0 }
 0x24b   :  { %942 = vmatpush3.bf16.msra.mxu0 %v997_v26 }
 0x24c   :  { %943 = vmatprep.subr.bf16.mxu0 %v1100_v0 }
 0x24f   :  { %944 = vmatpush3.bf16.msra.mxu0 %v998_v27 }
 0x2f2   :  { %v447_v46 = vpop.f32.mrf.mxu0 }
 0x2f3   :  { %v453_v48 = vrot.slane %v447_v46, 4  ;;  %v460_v49 = vmul.f32 %v447_v46, %v447_v46 }
 0x2f4   :  { %v907_v50 = vpop.f32.mrf.mxu0 }
 0x2f5   :  { %v454_v52 = vadd.f32 %v453_v48, %v447_v46  ;;  %v461_v53 = vrot.slane %v460_v49, 4 }
 0x2f6   :  { %v450_v54 = vpop.f32.mrf.mxu0 }
 0x2f7   :  { %v455_v55 = vrot.slane %v454_v52, 2  ;;  %v462_v56 = vadd.f32 %v461_v53, %v460_v49 }
 0x2f8   :  { %v908_v57 = vpop.f32.mrf.mxu0 }
 0x2f9   :  { %v456_v58 = vadd.f32 %v455_v55, %v454_v52  ;;  %v463_v59 = vrot.slane %v462_v56, 2  ;;  %v508_v52 = vld [vmem:[#allocation7 + $0x18] sm:$0xff] }
 0x2fb   :  { %v457_v60 = vrot.slane %v456_v58, 1  ;;  %v464_v61 = vadd.f32 %v463_v59, %v462_v56 }
 0x2fd   :  { %v458_v62 = vadd.f32 %v457_v60, %v456_v58  ;;  %v465_v63 = vrot.slane %v464_v61, 1 }
 0x2ff   :  { %v459_v1 = vmul.f32 0.125, %v458_v62  ;;  %v466_v2 = vadd.f32 %v465_v63, %v464_v61 }
 0x301   :  { %v467_v3 = vmul.f32 0.125, %v466_v2  ;;  %v468_v4 = vmul.f32 %v459_v1, %v459_v1 }
 0x303   :  { %v469_v5 = vsub.f32 %v467_v3, %v468_v4 }
 0x305   :  { %v470_v6 = vmax.f32 %v469_v5, 0.0 }
 0x307   :  { %v471_v7 = vadd.f32 1e-05, %v470_v6 }
 0x309   :  { %1003 = vrsqrt.f32 %v471_v7 }
 0x316   :  { %v1004_v9 = vpop.eup %1003 }
 0x317   :  { %v473_v10 = vmul.f32 %v1004_v9, %v363_v8 }
 0x319   :  { %v474_v11 = vmul.f32 %v473_v10, %v459_v1  ;;  %v482_v13 = vrot.slane %v473_v10, %v1156_v47  ;;  %v653_v1 = vld [vmem:[#allocation7 + $0x20] sm:$0xff] }
 0x31a   :  { %v658_v2 = vrot.slane %v653_v1, %v1156_v47 }
 0x31b   :  { %v476_v12 = vrot.slane %v474_v11, 7  ;;  %v483_v15 = vmul.f32 %v482_v13, %v447_v46 }
 0x31d   :  { %v478_v14 = vsub.f32 %v363_v8, %v476_v12 }
 0x31f   :  { %v487_v16 = vrot.slane %v478_v14, %v1159_v51 }
 0x321   :  { %v488_v17 = vadd.f32 %v487_v16, %v483_v15 }
 0x323   :  { %v489_v18 = vmax.f32 %v488_v17, 0.0 }
 0x325   :  { %v509_v19 = vpack.c.bf16 %v489_v18, %v489_v18 }
 0x327   :  { %926 = vmatmul.mubr.bf16.vlgmr.msra.gmra.mxu1 %v509_v19 }
 0x3e7   :  { %v592_v28 = vpop.f32.mrf.mxu1 }
 0x3e8   :  { %v598_v29 = vrot.slane %v592_v28, 4  ;;  %v605_v30 = vmul.f32 %v592_v28, %v592_v28 }
 0x3e9   :  { %v927_v31 = vpop.f32.mrf.mxu1 }
 0x3ea   :  { %v599_v32 = vadd.f32 %v598_v29, %v592_v28  ;;  %v606_v33 = vrot.slane %v605_v30, 4 }
 0x3eb   :  { %v595_v34 = vpop.f32.mrf.mxu1 }
 0x3ec   :  { %v600_v35 = vrot.slane %v599_v32, 2  ;;  %v607_v36 = vadd.f32 %v606_v33, %v605_v30 }
 0x3ed   :  { %v928_v37 = vpop.f32.mrf.mxu1 }
 0x3ee   :  { %v601_v38 = vadd.f32 %v600_v35, %v599_v32  ;;  %v608_v39 = vrot.slane %v607_v36, 2 }
 0x3f0   :  { %v602_v40 = vrot.slane %v601_v38, 1  ;;  %v609_v41 = vadd.f32 %v608_v39, %v607_v36 }
 0x3f2   :  { %v603_v42 = vadd.f32 %v602_v40, %v601_v38  ;;  %v610_v43 = vrot.slane %v609_v41, 1 }
 0x3f4   :  { %v604_v44 = vmul.f32 0.125, %v603_v42  ;;  %v611_v0 = vadd.f32 %v610_v43, %v609_v41 }
 0x3f6   :  { %v612_v45 = vmul.f32 0.125, %v611_v0  ;;  %v613_v46 = vmul.f32 %v604_v44, %v604_v44 }
 0x3f8   :  { %v614_v48 = vsub.f32 %v612_v45, %v613_v46 }
 0x3fa   :  { %v615_v49 = vmax.f32 %v614_v48, 0.0 }
 0x3fc   :  { %v616_v50 = vadd.f32 1e-05, %v615_v49 }
 0x3fe   :  { %1005 = vrsqrt.f32 %v616_v50 }
 0x40b   :  { %v1006_v53 = vpop.eup %1005 }
 0x40c   :  { %v618_v54 = vmul.f32 %v1006_v53, %v508_v52 }
 0x40e   :  { %v619_v55 = vmul.f32 %v618_v54, %v604_v44  ;;  %v627_v57 = vrot.slane %v618_v54, %v1156_v47 }
 0x410   :  { %v621_v56 = vrot.slane %v619_v55, 7  ;;  %v628_v59 = vmul.f32 %v627_v57, %v592_v28 }
 0x412   :  { %v623_v58 = vsub.f32 %v508_v52, %v621_v56 }
 0x414   :  { %v632_v60 = vrot.slane %v623_v58, %v1159_v51 }
 0x416   :  { %v633_v61 = vadd.f32 %v632_v60, %v628_v59 }
 0x418   :  { %v634_v62 = vmax.f32 %v633_v61, 0.0 }
 0x41a   :  { %v654_v63 = vpack.c.bf16 %v634_v62, %v634_v62 }
 0x41c   :  { %946 = vmatmul.mubr.bf16.vlgmr.msra.gmra.mxu0 %v654_v63 }
 0x4dc   :  { %v741_v3 = vpop.f32.mrf.mxu0 }
 0x4dd   :  { %v742_v4 = vadd.f32 %v741_v3, %v658_v2 }
 0x4de   :  { %v947_v5 = vpop.f32.mrf.mxu0 }
 0x4df   :  { %747 = vst [vmem:[#allocation8] sm:$0xff] %v742_v4 }
 0x4e0   :  { %v744_v6 = vpop.f32.mrf.mxu0 }
 0x4e1   :  { %1078 = shalt.err (!%p1075_p5)
}
 0x4e2   :  { %757 = dma.vmem_to_hbm [thread:$0]  %s755_s2, 128, %s1201_s3, [#allocation4]   ;;  %v948_v47 = vpop.f32.mrf.mxu0 }
 0x4e3   :  { %1091 = dma.done.wait [#allocation4], 128  }
 0x4e4   :  { %1092 = vsyncadd [#allocation4], 4294967168 }
 0x4e5   :  { %761 = vsyncpa [#allocation3], 1 }
 0x4e6   :  { %762 = vsyncpa [#allocation6], 1 }
 0x4e7   :  { %763 = vsyncpa [#allocation4], 1 }

</bundles_post_ra>
